<compile_context>
chip_gen: v6e
topology: v6e:2x2x1
jax: 0.10.0
libtpu: 0.0.40
codegen_flags: <defaults>
</compile_context>

<pallas_src>
import functools
from typing import NamedTuple

import numpy as np
import jax
import jax.numpy as jnp
from jax.experimental import pallas as pl
from jax.experimental.pallas import tpu as pltpu

LANE = 128  # TPU lane width


def _round_up(n, m):
    return ((n + m - 1) // m) * m


# ---------------------------------------------------------------------------
# Host-side graph preprocessing (done ONCE, cached across forward calls)
# ---------------------------------------------------------------------------
class PreparedGraph(NamedTuple):
    a_pad: jax.Array         # (n_pad, n_pad) bf16 padded normalized adjacency
    block_rows: jax.Array    # (nb,) int32 row-block id of each nonzero (tile,tile) block
    block_cols: jax.Array    # (nb,) int32 col-block id
    first_in_row: jax.Array  # (nb,) int32: 1 if first nonzero block of its row strip
    last_in_row: jax.Array   # (nb,) int32: 1 if last nonzero block of its row strip
    n: int
    n_pad: int
    tile: int
    num_blocks: int


def build_normalized_adjacency(edge_index, num_nodes):
    """Dense A_hat = D^{-1/2}(A + I)D^{-1/2}; duplicate edges counted (scatter-add)."""
    src, dst = edge_index[0], edge_index[1]
    A = jnp.zeros((num_nodes, num_nodes), jnp.float32)
    A = A.at[dst, src].add(1.0)
    A = A + jnp.eye(num_nodes, dtype=jnp.float32)
    deg = jnp.sum(A, axis=1)
    d = jnp.where(deg > 0, 1.0 / jnp.sqrt(deg), 0.0)
    return d[:, None] * A * d[None, :]


def prepare_graph(a_hat, *, tile=512):
    """One-time O(N^2) pad + bf16 cast and nonzero-block scan (hoisted out of the forward)."""
    N = a_hat.shape[0]
    n_pad = _round_up(N, tile)
    a_np = np.zeros((n_pad, n_pad), np.float32)
    a_np[:N, :N] = np.asarray(jax.device_get(a_hat), dtype=np.float32)

    nb = n_pad // tile
    mask = a_np.reshape(nb, tile, nb, tile).any(axis=(1, 3))
    rows, cols = np.nonzero(mask)            # row-major => sorted by (row, col)
    rows = rows.astype(np.int32)
    cols = cols.astype(np.int32)
    num_blocks = int(rows.size)
    first = np.ones(num_blocks, np.int32)
    last = np.ones(num_blocks, np.int32)
    if num_blocks > 1:
        first[1:] = (rows[1:] != rows[:-1]).astype(np.int32)
        last[:-1] = (rows[:-1] != rows[1:]).astype(np.int32)

    return PreparedGraph(
        a_pad=jnp.asarray(a_np, dtype=jnp.bfloat16),
        block_rows=jnp.asarray(rows),
        block_cols=jnp.asarray(cols),
        first_in_row=jnp.asarray(first),
        last_in_row=jnp.asarray(last),
        n=N, n_pad=n_pad, tile=tile, num_blocks=num_blocks)


# ---------------------------------------------------------------------------
# Kernel 1: feature transform  XW = X @ W   (row-tiled, weight resident, bf16 out)
# ---------------------------------------------------------------------------
def _feature_transform_kernel(x_ref, w_ref, o_ref):
    o_ref[...] = jnp.dot(
        x_ref[...], w_ref[...], preferred_element_type=jnp.float32
    ).astype(o_ref.dtype)


def feature_transform(x_bf16, w_bf16, *, tm):
    n_pad, f_pad = x_bf16.shape
    f_out = w_bf16.shape[1]
    return pl.pallas_call(
        _feature_transform_kernel,
        out_shape=jax.ShapeDtypeStruct((n_pad, f_out), jnp.bfloat16),
        grid_spec=pltpu.PrefetchScalarGridSpec(
            num_scalar_prefetch=0,
            grid=(n_pad // tm,),
            in_specs=[
                pl.BlockSpec((tm, f_pad), lambda i: (i, 0)),
                pl.BlockSpec((f_pad, f_out), lambda i: (0, 0)),  # weight resident
            ],
            out_specs=pl.BlockSpec((tm, f_out), lambda i: (i, 0)),
        ),
        compiler_params=pltpu.CompilerParams(
            dimension_semantics=("parallel",),
        ),
    )(x_bf16, w_bf16)


# ---------------------------------------------------------------------------
# Kernel 2: block-sparse aggregation  A_hat @ XW + b  with fused epilogues
# ---------------------------------------------------------------------------
def _accum_block(cols_ref, first_ref, a_ref, xw_ref, acc_ref, *, tk):
    b = pl.program_id(0)

    @pl.when(first_ref[b] == 1)
    def _():
        acc_ref[...] = jnp.zeros_like(acc_ref)

    start = pl.multiple_of(cols_ref[b] * tk, tk)
    # bf16 MXU matmul against the resident XW slice; f32 accumulation.
    acc_ref[...] += jnp.dot(
        a_ref[...], xw_ref[pl.ds(start, tk), :],
        preferred_element_type=jnp.float32)


def _agg_relu_w2_kernel(rows_ref, cols_ref, first_ref, last_ref,
                        a_ref, xw_ref, b_ref, w2_ref, o_ref, acc_ref, *, tk):
    _accum_block(cols_ref, first_ref, a_ref, xw_ref, acc_ref, tk=tk)

    @pl.when(last_ref[pl.program_id(0)] == 1)
    def _():
        h = jnp.maximum(acc_ref[...] + b_ref[...], 0.0)           # f32 epilogue
        # TODO(synk): training-mode dropout (pltpu.prng_* Bernoulli mask) would go here.
        # Fused layer-2 feature transform: write HW2 directly (no H round trip).
        o_ref[...] = jnp.dot(h.astype(w2_ref.dtype), w2_ref[...],
                             preferred_element_type=jnp.float32).astype(o_ref.dtype)


def _agg_logsoftmax_kernel(rows_ref, cols_ref, first_ref, last_ref,
                           a_ref, xw_ref, b_ref, o_ref, acc_ref, *, tk, num_valid_cols):
    _accum_block(cols_ref, first_ref, a_ref, xw_ref, acc_ref, tk=tk)

    @pl.when(last_ref[pl.program_id(0)] == 1)
    def _():
        z = acc_ref[...] + b_ref[...]                              # f32 epilogue
        col = jax.lax.broadcasted_iota(jnp.int32, z.shape, 1)
        valid = col < num_valid_cols
        zm = jnp.where(valid, z, -jnp.inf)
        m = jnp.max(zm, axis=1, keepdims=True)
        shifted = zm - m
        lse = jnp.log(jnp.sum(jnp.exp(shifted), axis=1, keepdims=True))
        o_ref[...] = jnp.where(valid, shifted - lse, 0.0).astype(o_ref.dtype)


def gcn_aggregate(prep, xw, bias, *, w2=None, num_valid_cols=None, out_dtype):
    n_pad, tile = prep.n_pad, prep.tile
    f_out = xw.shape[1]

    def a_map(b, rows, cols, first, last):
        return (rows[b], cols[b])

    def const_map(b, rows, cols, first, last):
        return (0, 0)

    def out_map(b, rows, cols, first, last):
        return (rows[b], 0)

    in_specs = [
        pl.BlockSpec((tile, tile), a_map),            # A_hat nonzero block stream
        pl.BlockSpec((n_pad, f_out), const_map),      # XW fully VMEM-resident
        pl.BlockSpec((1, f_out), const_map),          # bias resident
    ]
    args = [prep.a_pad, xw, bias]
    if w2 is not None:
        out_cols = w2.shape[1]
        in_specs.append(pl.BlockSpec((f_out, out_cols), const_map))  # W2 resident (32 KiB)
        args.append(w2)
        kernel = functools.partial(_agg_relu_w2_kernel, tk=tile)
    else:
        out_cols = f_out
        kernel = functools.partial(_agg_logsoftmax_kernel, tk=tile,
                                   num_valid_cols=num_valid_cols)

    out_bytes = jnp.dtype(out_dtype).itemsize
    vmem_bytes = (2 * tile * tile * 2            # A block, double-buffered bf16
                  + 2 * n_pad * f_out * 2        # resident XW (budget 2 buffers)
                  + 2 * tile * out_cols * out_bytes
                  + tile * f_out * 4             # f32 accumulator
                  + 4 * f_out * 4                # bias
                  + (2 * f_out * out_cols * 2 if w2 is not None else 0))
    vmem_limit = int(min(100 * 1024 * 1024, max(vmem_bytes + (4 << 20), 32 << 20)))

    return pl.pallas_call(
        kernel,
        out_shape=jax.ShapeDtypeStruct((n_pad, out_cols), out_dtype),
        grid_spec=pltpu.PrefetchScalarGridSpec(
            num_scalar_prefetch=4,
            grid=(prep.num_blocks,),
            in_specs=in_specs,
            out_specs=pl.BlockSpec((tile, out_cols), out_map),
            scratch_shapes=[pltpu.VMEM((tile, f_out), jnp.float32)],
        ),
        compiler_params=pltpu.CompilerParams(
            dimension_semantics=("arbitrary",),   # output blocks revisited within a row strip
            vmem_limit_bytes=vmem_limit,
        ),
    )(prep.block_rows, prep.block_cols, prep.first_in_row, prep.last_in_row, *args)


# ---------------------------------------------------------------------------
# Full forward (eval mode)
# ---------------------------------------------------------------------------
def gcn_forward(prep, x, w1, b1, w2, b2):
    """log_softmax( A_hat @ (relu(A_hat @ (X@W1) + b1) @ W2) + b2 ) via Pallas kernels."""
    N, n_pad, tile = prep.n, prep.n_pad, prep.tile
    F_in = x.shape[1]
    HID = w1.shape[1]
    C = w2.shape[1]
    f_pad = _round_up(F_in, LANE)
    h_pad = _round_up(HID, LANE)
    c_pad = _round_up(C, LANE)
    bf16, f32 = jnp.bfloat16, jnp.float32

    # Cheap O(N*F) pad/casts (the O(N^2) A_hat pad/cast lives in prepare_graph, cached).
    x_p = jnp.zeros((n_pad, f_pad), bf16).at[:N, :F_in].set(x.astype(bf16))
    w1_p = jnp.zeros((f_pad, h_pad), bf16).at[:F_in, :HID].set(w1.astype(bf16))
    b1_p = jnp.zeros((1, h_pad), f32).at[0, :HID].set(b1.reshape(-1).astype(f32))
    w2_p = jnp.zeros((h_pad, c_pad), bf16).at[:HID, :C].set(w2.astype(bf16))
    b2_p = jnp.zeros((1, c_pad), f32).at[0, :C].set(b2.reshape(-1).astype(f32))

    # Layer 1 feature transform: XW1 = X @ W1
    xw1 = feature_transform(x_p, w1_p, tm=tile)
    # Layer 1 aggregation, ReLU, (eval-mode dropout = identity) fused with layer-2 transform:
    #   HW2 = relu(A_hat @ XW1 + b1) @ W2
    hw2 = gcn_aggregate(prep, xw1, b1_p, w2=w2_p, out_dtype=bf16)
    # Layer 2 aggregation + masked log_softmax over the C real classes.
    out = gcn_aggregate(prep, hw2, b2_p, num_valid_cols=C, out_dtype=f32)
    return out[:N, :C]


# ---------------------------------------------------------------------------
# Pure-JAX reference (same dtype policy as the kernels)
# ---------------------------------------------------------------------------
def pure_jax_reference(a_hat, x, w1, b1, w2, b2):
    bf16, f32 = jnp.bfloat16, jnp.float32
    a = a_hat.astype(bf16)
    xw1 = jnp.dot(x.astype(bf16), w1.astype(bf16), preferred_element_type=f32)
    h = jnp.maximum(
        jnp.dot(a, xw1.astype(bf16), preferred_element_type=f32) + b1.reshape(1, -1), 0.0)
    hw2 = jnp.dot(h.astype(bf16), w2.astype(bf16), preferred_element_type=f32).astype(bf16)
    z = jnp.dot(a, hw2, preferred_element_type=f32) + b2.reshape(1, -1)
    return jax.nn.log_softmax(z, axis=1)


if __name__ == "__main__":
    key = jax.random.PRNGKey(0)
    k_x, k_s, k_d, k_w1, k_w2 = jax.random.split(key, 5)

    # Small synthetic banded "Cora-like" graph so the block-sparse path actually skips blocks.
    N = 600          # num nodes
    F_IN = 96        # num_node_features
    HID = 16         # hidden (GCNConv(F_IN, 16))
    C = 7            # num_classes (GCNConv(16, C))
    E = 2048         # num directed edges
    TILE = 256       # small demo graph; use the 512 default at Cora scale

    x = jax.random.normal(k_x, (N, F_IN), jnp.float32)
    src = jax.random.randint(k_s, (E,), 0, N)
    dst = jnp.clip(src + jax.random.randint(k_d, (E,), -64, 65), 0, N - 1)
    edge_index = jnp.stack([src, dst])
    a_hat = build_normalized_adjacency(edge_index, N)

    # Deterministic parameter init (Glorot-ish scaling), zero biases like PyG GCNConv.
    w1 = jax.random.normal(k_w1, (F_IN, HID), jnp.float32) * (1.0 / jnp.sqrt(F_IN))
    b1 = jnp.zeros((HID,), jnp.float32)
    w2 = jax.random.normal(k_w2, (HID, C), jnp.float32) * (1.0 / jnp.sqrt(HID))
    b2 = jnp.zeros((C,), jnp.float32)

    prep = prepare_graph(a_hat, tile=TILE)   # one-time pad/cast + block-sparsity scan (cached)
    out = gcn_forward(prep, x, w1, b1, w2, b2)
    out = jax.block_until_ready(out)

    ref = pure_jax_reference(a_hat, x, w1, b1, w2, b2)
    n_row_tiles = prep.n_pad // TILE
    assert out.shape == (N, C)
    assert prep.num_blocks < n_row_tiles * n_row_tiles   # sparse path skipped >=1 zero block
    assert bool(jnp.all(jnp.isfinite(out))), "non-finite outputs"
    assert jnp.allclose(out, ref, atol=3e-3, rtol=3e-3), "mismatch vs reference"
    # log_softmax rows must sum (in prob space) to ~1
    assert jnp.allclose(jnp.sum(jnp.exp(out), axis=1), 1.0, atol=1e-3)

    print("KERNEL_OK")
</pallas_src>

<mosaic_0001>
module attributes {stable_mosaic.version = 11 : i64} {
  func.func @_feature_transform_kernel(%arg0: i32, %arg1: memref<256x128xbf16, #tpu.memory_space<vmem>>, %arg2: memref<128x128xbf16, #tpu.memory_space<vmem>>, %arg3: memref<256x128xbf16, #tpu.memory_space<vmem>>) attributes {dimension_semantics = [#tpu.dimension_semantics<parallel>], iteration_bounds = array<i64: 3>, scalar_prefetch = 0 : i64, scratch_operands = 0 : i64, tpu.core_type = #tpu.core_type<tc>, window_params = [{transform_indices = @transform_0, window_bounds = array<i64: 256, 128>}, {pipeline_mode = #tpu.pipeline_mode<synchronous>, transform_indices = @transform_1, window_bounds = array<i64: 128, 128>}, {transform_indices = @transform_2, window_bounds = array<i64: 256, 128>}]} {
    %c0 = arith.constant 0 : index
    %c0_0 = arith.constant 0 : index
    %0 = vector.load %arg1[%c0, %c0_0] : memref<256x128xbf16, #tpu.memory_space<vmem>>, vector<256x128xbf16>
    %c0_1 = arith.constant 0 : index
    %c0_2 = arith.constant 0 : index
    %1 = vector.load %arg2[%c0_1, %c0_2] : memref<128x128xbf16, #tpu.memory_space<vmem>>, vector<128x128xbf16>
    %cst = arith.constant dense<0.000000e+00> : vector<256x128xf32>
    %2 = tpu.matmul %0, %1, %cst {dimension_numbers = #tpu.dot_dimension_numbers<[1], [0], [0], [1], [0, 0, 1, 1], [], []>} : vector<256x128xbf16>, vector<128x128xbf16>, vector<256x128xf32> -> vector<256x128xf32>
    %3 = arith.truncf %2 : vector<256x128xf32> to vector<256x128xbf16>
    %c0_3 = arith.constant 0 : index
    %c0_4 = arith.constant 0 : index
    %4 = vector.load %arg3[%c0_3, %c0_4] : memref<256x128xbf16, #tpu.memory_space<vmem>>, vector<256x128xbf16>
    tpu.vector_store %arg3[%c0_3, %c0_4], %3 {strides = array<i32>} : memref<256x128xbf16, #tpu.memory_space<vmem>>, vector<256x128xbf16>,
    return
  }
  func.func @transform_0(%arg0: i32) -> (i32, i32) {
    %c0_i32 = arith.constant 0 : i32
    %c0_i32_0 = arith.constant 0 : i32
    return %arg0, %c0_i32 : i32, i32
  }
  func.func @transform_1(%arg0: i32) -> (i32, i32) {
    %c0_i32 = arith.constant 0 : i32
    %c0_i32_0 = arith.constant 0 : i32
    %c0_i32_1 = arith.constant 0 : i32
    return %c0_i32, %c0_i32_0 : i32, i32
  }
  func.func @transform_2(%arg0: i32) -> (i32, i32) {
    %c0_i32 = arith.constant 0 : i32
    %c0_i32_0 = arith.constant 0 : i32
    return %arg0, %c0_i32 : i32, i32
  }
}

</mosaic_0001>

<bundles_post_ra>
// kernel: tpu_custom_call.1
= control target key start
LH: loop header
LB: loop body
LE: loop exit
PB: predicated region body
PF: predicated region fallthrough
CT: control target
= control target key end

     0   :  { %7 = vsyncpa [#allocation3], 0  ;;  %s1532_s0 = inlined_call_operand.hbm [shape: bf16[768,128], index: 0, kind: input, shape index: {}]   ;;  %s1533_s1 = inlined_call_operand.hbm [shape: bf16[128,128], index: 1, kind: input, shape index: {}]   ;;  %s1534_s2 = inlined_call_operand.hbm [shape: bf16[768,128], index: 2, kind: output, shape index: {}]  }
   0x1   :  { %9 = vsyncpa [#allocation3 + $0x1], 0 }
   0x2   :  { %10 = vsyncpa [#allocation6], 0 }
   0x3   :  { %11 = vsyncpa [#allocation4], 0 }
   0x4   :  { %13 = vsyncpa [#allocation4 + $0x1], 0  ;;  %s1310_s9 = smov 0   ;;  %s1312_s10 = smov 0  }
   0x5   :  { %s1314_s11 = smov 0   ;;  %s1316_s12 = smov 0  }
   0x6 LB: > { %s1331_s13 = sadd.s32 4294967295, %s1286_s12   ;;  %s790_s14 = sadd.s32 4294967294, %s1286_s12   ;;  %s1286_s12 = sphi %s1316_s12, %s1555_s12   ;;  %s1282_s11 = sphi %s1314_s11, %s1554_s11   ;;  %s1278_s10 = sphi %s1312_s10, %s1553_s10   ;;  %s1274_s9 = sphi %s1310_s9, %s1552_s9  }
   0x7   : > { %p39_p0 = scmp.ne.s32.totalorder %s1278_s10, %s1274_s9  ;;  %p1535_p1 = scmp.eq.s32.totalorder %s1331_s13, 0 }
   0x8   : > { %p90_p3 = scmp.eq.s32.totalorder %s790_s14, 2  ;;  %p791_p5 = scmp.ge.s32.totalorder %s1286_s12, 1 }
   0x9   : > { %p1340_p4 = por %p1535_p1, %p39_p0  ;;  %p97_p7 = scmp.lt.s32.totalorder %s1286_s12, 4 }
   0xa   : > { %p1345_p6 = por %p90_p3, %p39_p0  ;;  %s1288_s18 = smov [#allocation5]  }
   0xb   : > { %s1539_s15 = scalar_select %p1340_p4, 1, 0 }
   0xc   : > { %s1540_s16 = scalar_select %p1345_p6, 1, 0 }
   0xd   : > { %p1350_p8 = pnand %p791_p5, %p97_p7  ;;  %s109_s19 = sshll.u32 %s1288_s18, 4  ;;  %s110_s19 = int_to_ptr.vmem [resolvable:$true] %s109_s19 }
   0xe   : > { %s1363_s21 = sadd.s32 1, %s1286_s12   ;;  %s26_s22 = sadd.s32 1, %s1282_s11 }
   0xf   : > { %s1541_s17 = scalar_select %p1350_p8, 1, 0 }
  0x10   : > { %p1087_p9 = pneg %p1350_p8  ;;  %s23_s23 = ssub.s32 %s1286_s12, %s1363_s21 }
  0x11   : > { %s1175_s24 = scalar_lea.vmem %s110_s19, 1024  ;;  %p1183_p3 = scmp.lt.s32.totalorder %s110_s19, %s110_s19 }
  0x12   : > { %p1358_p10 = pnand %p1087_p9, %p1535_p1  ;;  %p1176_p12 = scmp.ne.s32.totalorder %s110_s19, %s1175_s24 }
  0x13   : > { %p1184_p5 = scmp.lt.s32.totalorder %s1175_s24, %s1175_s24 }
  0x14   : > { %p1166_p11 = pneg %p1358_p10 }
  0x15   : > { %p1185_p7 = por %p1184_p5, %p1183_p3 }
  0x16   : > { %p1178_p13 = pnand %p1176_p12, %p1166_p11 }
  0x18   : > { %p1179_p0 = pneg %p1178_p13 }
  0x1a   : > { %p1186_p2 = pnand %p1185_p7, %p1179_p0 }
  0x1c   : > { %1189 = shalt.err (!%p1186_p2)
}
  0x1d   : > { %s1289_s25 = smov 64   ;;  %s1290_s26 = smov 4  }
  0x1e   : > { %1090 = dma.hbm_to_vmem [thread:$0]  (!%p1358_p10), %s1533_s1, 1024, %s110_s19, [#allocation6], %s1289_s25, %s1289_s25, %s1290_s26  }
  0x1f   : > { %p24_p2 = scmp.eq.s32.totalorder %s23_s23, 0  ;;  %p33_p9 = scmp.ne.s32.totalorder %s1282_s11, %s1278_s10 }
  0x20   : > { %p34_p11 = scmp.eq.s32.totalorder %s1286_s12, 0  ;;  %p1100_p12 = scmp.lt.s32.totalorder %s1286_s12, 3 }
  0x21   : > { %s1383_s29 = scalar_select %p24_p2, %s1282_s11, %s26_s22  }
  0x22   : > { %p35_p13 = por %p34_p11, %p33_p9  ;;  %p1543_p0 = scmp.eq.s32.totalorder %s1331_s13, 2 }
  0x23   : > { %s123_s3 = sand.u32 1, %s1282_s11   ;;  %s862_s4 = sshll.u32 %s1286_s12, 11 }
  0x24   : > { %p1387_p3 = por %p1543_p0, %p33_p9  ;;  %s794_s5 = sshll.u32 %s123_s3, 7 }
  0x25   : > { %s1396_s8 = scalar_lea.hbm %s1532_s0, %s862_s4  ;;  %s127_s14 = scalar_lea.vmem [#allocation2], %s794_s5 }
  0x26   : > { %s1544_s30 = scalar_select %p1387_p3, 1, 0 }
  0x27   : > { %s134_s18 = sshll.u32 %s127_s14, 4  ;;  %p1398_p10 = pnand %p1100_p12, %p35_p13  ;;  %s1402_s18 = int_to_ptr.vmem [resolvable:$true] %s134_s18 }
  0x28   : > { %s1404_s20 = scalar_lea.sflag [#allocation3], %s123_s3  ;;  %s1190_s22 = scalar_lea.hbm %s1396_s8, 2048 }
  0x29   : > { %p1191_p5 = scmp.ne.s32.totalorder %s1396_s8, %s1190_s22  ;;  %p1192_p7 = pneg %p1398_p10 }
  0x2a   : > { %s1195_s27 = scalar_lea.hbm %s1532_s0, 6144  ;;  %p1196_p11 = scmp.lt.s32.totalorder %s1396_s8, %s1532_s0 }
  0x2b   : > { %p1193_p2 = pnand %p1192_p7, %p1191_p5  ;;  %p1197_p12 = scmp.lt.s32.totalorder %s1195_s27, %s1190_s22 }
  0x2d   : > { %p1194_p9 = pneg %p1193_p2  ;;  %p1198_p13 = por %p1197_p12, %p1196_p11 }
  0x2f   : > { %p1199_p0 = pnand %p1198_p13, %p1194_p9 }
  0x31   : > { %1202 = shalt.err (!%p1199_p0)
}
  0x32   : > { %s1203_s3 = scalar_lea.vmem %s1402_s18, 2048  ;;  %s1291_s5 = smov [#allocation2]  }
  0x33   : > { %p1204_p1 = scmp.ne.s32.totalorder %s1402_s18, %s1203_s3  ;;  %s1208_s6 = sshll.u32 %s1291_s5, 4  ;;  %s1209_s6 = int_to_ptr.vmem [resolvable:$false] %s1208_s6 }
  0x34   : > { %s1210_s7 = scalar_lea.vmem %s1209_s6, 4096  ;;  %p1211_p2 = scmp.lt.s32.totalorder %s1402_s18, %s1209_s6 }
  0x35   : > { %p1206_p6 = pnand %p1204_p1, %p1192_p7  ;;  %p1212_p3 = scmp.lt.s32.totalorder %s1210_s7, %s1203_s3 }
  0x37   : > { %p1207_p5 = pneg %p1206_p6  ;;  %p1213_p4 = por %p1212_p3, %p1211_p2 }
  0x39   : > { %p1214_p8 = pnand %p1213_p4, %p1207_p5 }
  0x3b   : > { %1217 = shalt.err (!%p1214_p8)
}
  0x3c   : > { %1094 = dma.hbm_to_vmem [thread:$0]  (!%p1398_p10), %s1396_s8, 2048, %s1402_s18, %s1404_s20, %s1289_s25, %s1289_s25, %s1290_s26  }
  0x3d   : > { %p1546_p1 = scmp.ne.s32.totalorder %s1541_s17, 0 }
  0x3e   : > { %s1431_s14 = sand.u32 (!%p1546_p1), 1, %s1278_s10   ;;  %p1547_p4 = scmp.ne.s32.totalorder (!%p1546_p1), %s1539_s15, 0 }
  0x3f   : > { %146 = sbr.rel (%p1546_p1) target bundleno = 344 (0x158), region = 28  ;;  %s798_s22 = sshll.u32 (!%p1546_p1), %s1431_s14, 7 }
  0x40   : > { %s149_s23 = scalar_lea.sflag (!%p1546_p1), [#allocation3], %s1431_s14  ;;  %s1437_s19 = scalar_lea.vmem (!%p1546_p1), [#allocation2], %s798_s22 }
  0x44   : > { %1261 = dma.done.wait (%p1547_p4), %s149_s23, 2048  }
  0x45   : > { %1263 = vsyncadd (%p1547_p4), %s149_s23, 4294965248  ;;  %p1548_p6 = scmp.eq.s32.totalorder %s1331_s13, 0 }
  0x47   : > { %1265 = dma.done.wait (%p1548_p6), [#allocation6], 1024   ;;  %p1549_p8 = pmov %p1548_p6 }
  0x48   : > { %v1140_v0 = vld [vmem:[#allocation5 + $0x38] sm:$0xff]   ;;  %v1141_v1 = vld [vmem:[#allocation5 + $0x30] sm:$0xff]   ;;  %v1142_v2 = vld [vmem:[#allocation5 + $0x28] sm:$0xff]   ;;  %s1465_s15 = scalar_lea.vmem [#allocation7], %s798_s22  ;;  %s895_s17 = sshll.u32 %s1331_s13, 11 }
  0x49   : > { %1267 = vsyncadd (%p1549_p8), [#allocation6], 4294966272  ;;  %1015 = vmatprep.subr.bf16.mxu0 %v1140_v0  ;;  %1063 = vmatprep.subr.bf16.mxu1 %v1140_v0  ;;  %v1143_v3 = vld [vmem:[#allocation5 + $0x20] sm:$0xff]   ;;  %v1144_v6 = vld [vmem:[#allocation5 + $0x18] sm:$0xff]   ;;  %s707_s25 = sshll.u32 %s1465_s15, 4  ;;  %s1484_s18 = scalar_lea.hbm %s1534_s2, %s895_s17  ;;  %s1486_s25 = int_to_ptr.vmem [resolvable:$true] %s707_s25 }
  0x4a   : > { %1016 = vmatpush3.bf16.msra.mxu0 %v1140_v0  ;;  %1071 = vmatpush3.bf16.msra.mxu1 %v1140_v0  ;;  %v1148_v4 = vld [vmem:[%s1437_s19] sm:$0xff]   ;;  %v1145_v7 = vld [vmem:[#allocation5 + $0x10] sm:$0xff]   ;;  %v1146_v8 = vld [vmem:[#allocation5 + $0x8] sm:$0xff]   ;;  %s694_s13 = scalar_lea.sflag [#allocation4], %s1431_s14  ;;  %s1218_s20 = scalar_lea.vmem %s1486_s25, 2048 }
  0x4b   : > { %1017 = vmatprep.subr.bf16.mxu0 %v1141_v1  ;;  %1064 = vmatprep.subr.bf16.mxu1 %v1141_v1  ;;  %v1149_v5 = vld [vmem:[%s1437_s19 + $0x40] sm:$0xff]   ;;  %v1150_v10 = vld [vmem:[%s1437_s19 + $0x8] sm:$0xff]   ;;  %v1152_v12 = vld [vmem:[%s1437_s19 + $0x10] sm:$0xff]   ;;  %p1219_p3 = scmp.ne.s32.totalorder %s1486_s25, %s1218_s20  ;;  %p1550_p10 = scmp.ne.s32.totalorder %s1544_s30, 0 }
  0x4c   : > { %1031 = vmatprep.mubr.bf16.mxu0 %v1148_v4  ;;  %1047 = vmatprep.mubr.bf16.mxu1 %v1149_v5  ;;  %v1147_v9 = vld [vmem:[#allocation5] sm:$0xff]   ;;  %v1151_v11 = vld [vmem:[%s1437_s19 + $0x48] sm:$0xff]   ;;  %v1153_v13 = vld [vmem:[%s1437_s19 + $0x50] sm:$0xff]   ;;  %s1292_s24 = smov [#allocation7]  }
  0x4d   : > { %v1154_v14 = vld [vmem:[%s1437_s19 + $0x18] sm:$0xff]   ;;  %v1156_v16 = vld [vmem:[%s1437_s19 + $0x20] sm:$0xff]   ;;  %v1158_v18 = vld [vmem:[%s1437_s19 + $0x28] sm:$0xff]   ;;  %p1220_p7 = pnand %p1219_p3, %p1550_p10  ;;  %s1222_s27 = sshll.u32 %s1292_s24, 4  ;;  %s1223_s27 = int_to_ptr.vmem [resolvable:$false] %s1222_s27 }
  0x4e   : > { %1018 = vmatpush3.bf16.msra.mxu0 %v1141_v1  ;;  %1072 = vmatpush3.bf16.msra.mxu1 %v1141_v1  ;;  %v1155_v15 = vld [vmem:[%s1437_s19 + $0x58] sm:$0xff]   ;;  %v1157_v17 = vld [vmem:[%s1437_s19 + $0x60] sm:$0xff]   ;;  %v1159_v19 = vld [vmem:[%s1437_s19 + $0x68] sm:$0xff]   ;;  %s1224_s28 = scalar_lea.vmem %s1223_s27, 4096  ;;  %p1225_p11 = scmp.lt.s32.totalorder %s1486_s25, %s1223_s27 }
  0x4f   : > { %1019 = vmatprep.subr.bf16.mxu0 %v1142_v2  ;;  %1065 = vmatprep.subr.bf16.mxu1 %v1142_v2  ;;  %v1160_v20 = vld [vmem:[%s1437_s19 + $0x30] sm:$0xff]   ;;  %v1162_v22 = vld [vmem:[%s1437_s19 + $0x38] sm:$0xff]   ;;  %p1221_p9 = pneg %p1220_p7  ;;  %p1226_p12 = scmp.lt.s32.totalorder %s1224_s28, %s1218_s20 }
  0x50   : > { %v1161_v21 = vld [vmem:[%s1437_s19 + $0x70] sm:$0xff]   ;;  %v1163_v23 = vld [vmem:[%s1437_s19 + $0x78] sm:$0xff]  }
  0x51   : > { %p1227_p13 = por %p1226_p12, %p1225_p11 }
  0x52   : > { %1020 = vmatpush3.bf16.msra.mxu0 %v1142_v2  ;;  %1073 = vmatpush3.bf16.msra.mxu1 %v1142_v2 }
  0x53   : > { %1021 = vmatprep.subr.bf16.mxu0 %v1143_v3  ;;  %1066 = vmatprep.subr.bf16.mxu1 %v1143_v3  ;;  %p1228_p0 = pnand %p1227_p13, %p1221_p9 }
  0x56   : > { %1022 = vmatpush3.bf16.msra.mxu0 %v1143_v3  ;;  %1074 = vmatpush3.bf16.msra.mxu1 %v1143_v3 }
  0x57   : > { %1023 = vmatprep.subr.bf16.mxu0 %v1144_v6  ;;  %1067 = vmatprep.subr.bf16.mxu1 %v1144_v6 }
  0x5a   : > { %1024 = vmatpush3.bf16.msra.mxu0 %v1144_v6  ;;  %1075 = vmatpush3.bf16.msra.mxu1 %v1144_v6 }
  0x5b   : > { %1025 = vmatprep.subr.bf16.mxu0 %v1145_v7  ;;  %1068 = vmatprep.subr.bf16.mxu1 %v1145_v7 }
  0x5e   : > { %1026 = vmatpush3.bf16.msra.mxu0 %v1145_v7  ;;  %1076 = vmatpush3.bf16.msra.mxu1 %v1145_v7 }
  0x5f   : > { %1027 = vmatprep.subr.bf16.mxu0 %v1146_v8  ;;  %1069 = vmatprep.subr.bf16.mxu1 %v1146_v8 }
  0x62   : > { %1028 = vmatpush3.bf16.msra.mxu0 %v1146_v8  ;;  %1077 = vmatpush3.bf16.msra.mxu1 %v1146_v8 }
  0x63   : > { %1029 = vmatprep.subr.bf16.mxu0 %v1147_v9  ;;  %1070 = vmatprep.subr.bf16.mxu1 %v1147_v9 }
  0x66   : > { %1030 = vmatpush3.bf16.msra.mxu0 %v1147_v9  ;;  %1078 = vmatpush3.bf16.msra.mxu1 %v1147_v9 }
  0x69   : > { %1032 = vmatmul.mubr.bf16.vlgmr.msra.gmra.mxu0 %v1150_v10  ;;  %1048 = vmatmul.mubr.bf16.vlgmr.msra.gmra.mxu1 %v1151_v11 }
  0x6a   : > { %1035 = vmatprep.mubr.bf16.mxu0 %v1152_v12  ;;  %1051 = vmatprep.mubr.bf16.mxu1 %v1153_v13 }
  0x71   : > { %1036 = vmatmul.mubr.bf16.gmra.mxu0 %v1154_v14  ;;  %1052 = vmatmul.mubr.bf16.gmra.mxu1 %v1155_v15 }
  0x72   : > { %1039 = vmatprep.mubr.bf16.mxu0 %v1156_v16  ;;  %1055 = vmatprep.mubr.bf16.mxu1 %v1157_v17 }
  0x79   : > { %1040 = vmatmul.mubr.bf16.gmra.mxu0 %v1158_v18  ;;  %1056 = vmatmul.mubr.bf16.gmra.mxu1 %v1159_v19 }
  0x7a   : > { %1043 = vmatprep.mubr.bf16.mxu0 %v1160_v20  ;;  %1059 = vmatprep.mubr.bf16.mxu1 %v1161_v21 }
  0x81   : > { %1044 = vmatmul.mubr.bf16.gmra.mxu0 %v1162_v22  ;;  %1060 = vmatmul.mubr.bf16.gmra.mxu1 %v1163_v23 }
 0x129   : > { %v1033_v24 = vpop.f32.mrf.mxu0  ;;  %v1049_v25 = vpop.f32.mrf.mxu1 }
 0x12b   : > { %v406_v26 = vpop.f32.mrf.mxu0  ;;  %v470_v27 = vpop.f32.mrf.mxu1 }
 0x12d   : > { %v1034_v28 = vpop.f32.mrf.mxu0  ;;  %v1050_v29 = vpop.f32.mrf.mxu1 }
 0x12e   : > { %v904_v30 = vpack.c.bf16 %v1034_v28, %v1033_v24  ;;  %v944_v31 = vpack.c.bf16 %v1050_v29, %v1049_v25 }
 0x12f   : > { %v409_v32 = vpop.f32.mrf.mxu0  ;;  %v473_v33 = vpop.f32.mrf.mxu1 }
 0x130   : > { %976 = vst [vmem:[%s1465_s15 + $0x8] sm:$0xff] %v904_v30   ;;  %984 = vst [vmem:[%s1465_s15 + $0x48] sm:$0xff] %v944_v31   ;;  %v899_v34 = vpack.c.bf16 %v409_v32, %v406_v26  ;;  %v939_v35 = vpack.c.bf16 %v473_v33, %v470_v27 }
 0x131   : > { %v1037_v36 = vpop.f32.mrf.mxu0  ;;  %v1053_v37 = vpop.f32.mrf.mxu1 }
 0x132   : > { %900 = vst [vmem:[%s1465_s15] sm:$0xff] %v899_v34   ;;  %983 = vst [vmem:[%s1465_s15 + $0x40] sm:$0xff] %v939_v35  }
 0x133   : > { %v422_v38 = vpop.f32.mrf.mxu0  ;;  %v486_v39 = vpop.f32.mrf.mxu1 }
 0x135   : > { %v1038_v40 = vpop.f32.mrf.mxu0  ;;  %v1054_v41 = vpop.f32.mrf.mxu1 }
 0x136   : > { %v914_v42 = vpack.c.bf16 %v1038_v40, %v1037_v36  ;;  %v954_v43 = vpack.c.bf16 %v1054_v41, %v1053_v37 }
 0x137   : > { %v425_v44 = vpop.f32.mrf.mxu0  ;;  %v489_v45 = vpop.f32.mrf.mxu1 }
 0x138   : > { %978 = vst [vmem:[%s1465_s15 + $0x18] sm:$0xff] %v914_v42   ;;  %986 = vst [vmem:[%s1465_s15 + $0x58] sm:$0xff] %v954_v43   ;;  %v909_v46 = vpack.c.bf16 %v425_v44, %v422_v38  ;;  %v949_v47 = vpack.c.bf16 %v489_v45, %v486_v39 }
 0x139   : > { %v1041_v48 = vpop.f32.mrf.mxu0  ;;  %v1057_v49 = vpop.f32.mrf.mxu1 }
 0x13a   : > { %977 = vst [vmem:[%s1465_s15 + $0x10] sm:$0xff] %v909_v46   ;;  %985 = vst [vmem:[%s1465_s15 + $0x50] sm:$0xff] %v949_v47  }
 0x13b   : > { %v438_v50 = vpop.f32.mrf.mxu0  ;;  %v502_v51 = vpop.f32.mrf.mxu1 }
 0x13d   : > { %v1042_v52 = vpop.f32.mrf.mxu0  ;;  %v1058_v53 = vpop.f32.mrf.mxu1 }
 0x13e   : > { %v924_v54 = vpack.c.bf16 %v1042_v52, %v1041_v48  ;;  %v964_v55 = vpack.c.bf16 %v1058_v53, %v1057_v49 }
 0x13f   : > { %v441_v56 = vpop.f32.mrf.mxu0  ;;  %v505_v57 = vpop.f32.mrf.mxu1 }
 0x140   : > { %980 = vst [vmem:[%s1465_s15 + $0x28] sm:$0xff] %v924_v54   ;;  %988 = vst [vmem:[%s1465_s15 + $0x68] sm:$0xff] %v964_v55   ;;  %v919_v58 = vpack.c.bf16 %v441_v56, %v438_v50  ;;  %v959_v59 = vpack.c.bf16 %v505_v57, %v502_v51 }
 0x141   : > { %v1045_v60 = vpop.f32.mrf.mxu0  ;;  %v1061_v61 = vpop.f32.mrf.mxu1 }
 0x142   : > { %979 = vst [vmem:[%s1465_s15 + $0x20] sm:$0xff] %v919_v58   ;;  %987 = vst [vmem:[%s1465_s15 + $0x60] sm:$0xff] %v959_v59  }
 0x143   : > { %v454_v62 = vpop.f32.mrf.mxu0  ;;  %v518_v63 = vpop.f32.mrf.mxu1 }
 0x145   : > { %v1046_v0 = vpop.f32.mrf.mxu0  ;;  %v1062_v1 = vpop.f32.mrf.mxu1 }
 0x146   : > { %v934_v2 = vpack.c.bf16 %v1046_v0, %v1045_v60  ;;  %v974_v3 = vpack.c.bf16 %v1062_v1, %v1061_v61 }
 0x147   : > { %v457_v4 = vpop.f32.mrf.mxu0  ;;  %v521_v5 = vpop.f32.mrf.mxu1 }
 0x148   : > { %982 = vst [vmem:[%s1465_s15 + $0x38] sm:$0xff] %v934_v2   ;;  %990 = vst [vmem:[%s1465_s15 + $0x78] sm:$0xff] %v974_v3   ;;  %v929_v6 = vpack.c.bf16 %v457_v4, %v454_v62  ;;  %v969_v7 = vpack.c.bf16 %v521_v5, %v518_v63 }
 0x14a   : > { %981 = vst [vmem:[%s1465_s15 + $0x30] sm:$0xff] %v929_v6   ;;  %989 = vst [vmem:[%s1465_s15 + $0x70] sm:$0xff] %v969_v7  }
 0x14b   : > { %1231 = shalt.err (!%p1228_p0)
}
 0x14c   : > { %s1232_s4 = scalar_lea.hbm %s1484_s18, 2048  ;;  %s1236_s6 = scalar_lea.hbm %s1534_s2, 6144 }
 0x14d   : > { %p1233_p5 = scmp.ne.s32.totalorder %s1484_s18, %s1232_s4  ;;  %p1237_p4 = scmp.lt.s32.totalorder %s1484_s18, %s1534_s2 }
 0x14e   : > { %p1238_p6 = scmp.lt.s32.totalorder %s1236_s6, %s1232_s4 }
 0x14f   : > { %p1234_p2 = pnand %p1233_p5, %p1550_p10 }
 0x150   : > { %p1239_p8 = por %p1238_p6, %p1237_p4 }
 0x151   : > { %p1235_p1 = pneg %p1234_p2 }
 0x153   : > { %p1240_p3 = pnand %p1239_p8, %p1235_p1 }
 0x155   : > { %1243 = shalt.err (!%p1240_p3)
}
 0x156   : > { %s1293_s23 = smov 64   ;;  %s1294_s19 = smov 4  }
 0x157   : > { %1085 = dma.vmem_to_hbm [thread:$0]  (%p1550_p10), %s1486_s25, 2048, %s1484_s18, %s694_s13, %s1293_s23, %s1293_s23, %s1294_s19  }
 0x158 PF: > { %p1102_p7 = scmp.ge.s32.totalorder %s1286_s12, 2  ;;  %s722_s15 = sand.u32 1, %s1274_s9  }
 0x159   : > { %p1551_p9 = scmp.ne.s32.totalorder %s1540_s16, 0  ;;  %s723_s17 = scalar_lea.sflag [#allocation4], %s722_s15 }
 0x15b   : > { %p1096_p11 = pnand %p1102_p7, %p1551_p9 }
 0x15d   : > { %p1097_p12 = pneg %p1096_p11 }
 0x15f   : > { %1269 = dma.done.wait (%p1097_p12), %s723_s17, 2048  }
 0x160   : > { %1271 = vsyncadd (%p1097_p12), %s723_s17, 4294965248  ;;  %p16_p13 = scmp.ge.s32.totalorder %s1363_s21, 5   ;;  %s1552_s9 = smov %s1278_s10 }
 0x161   : > { %s1553_s10 = smov %s1282_s11  ;;  %s1554_s11 = smov %s1383_s29 }
 0x162   : > { %s1555_s12 = smov %s1363_s21  ;;  %18 = sbr.rel (!%p16_p13) target bundleno = 6 (0x6), region = 77 }
 0x167   :  { %728 = vsyncpa [#allocation3], 1 }
 0x168   :  { %730 = vsyncpa [#allocation3 + $0x1], 1 }
 0x169   :  { %731 = vsyncpa [#allocation6], 1 }
 0x16a   :  { %732 = vsyncpa [#allocation4], 1 }
 0x16b   :  { %734 = vsyncpa [#allocation4 + $0x1], 1 }

</bundles_post_ra>
